<compile_context>
chip_gen: v6e
topology: v6e:2x2x1
jax: 0.10.0
libtpu: 0.0.40
codegen_flags: <defaults>
</compile_context>

<pallas_src>
import jax
import jax.numpy as jnp
from jax.experimental import pallas as pl
from jax.experimental.pallas import tpu as pltpu


def _round_up(x: int, m: int) -> int:
    return (x + m - 1) // m * m


def _label_cls_head_kernel(x_ref, w1_ref, b1_ref, w2_ref, b2_ref,
                           w3_ref, b3_ref, o_ref):
    """Fused 3-layer MLP head on one batch tile: ReLU, ReLU, Sigmoid.

    x_ref: (TM, DF) f32 (cast to bf16 on-chip), weights bf16, biases f32.
    Three MXU matmuls with f32 accumulation; bias/activation math in f32.
    """
    x = x_ref[...].astype(jnp.bfloat16)                            # on-chip bf16 cast

    h = jnp.dot(x, w1_ref[...], preferred_element_type=jnp.float32)
    h = jnp.maximum(h + b1_ref[...], 0.0)                          # Linear + ReLU

    h = jnp.dot(h.astype(jnp.bfloat16), w2_ref[...],
                preferred_element_type=jnp.float32)
    h = jnp.maximum(h + b2_ref[...], 0.0)                          # Linear + ReLU

    # TODO(synk): Dropout is eval-mode identity (params.dropout = 0.0); no kernel op.

    logits = jnp.dot(h.astype(jnp.bfloat16), w3_ref[...],
                     preferred_element_type=jnp.float32)
    o_ref[...] = jax.nn.sigmoid(logits + b3_ref[...]).astype(o_ref.dtype)


def _choose_tm(batch: int, d_feature: int) -> int:
    """Batch-tile rows: big tiles to amortize per-step overhead, >= 2 grid
    steps once there is enough work (v7x megacore), 16-row granularity."""
    if batch <= 32:
        return max(batch, 1)                     # single tile == full (tiny) batch
    tm = min(2048, _round_up(pl.cdiv(batch, 2), 16))
    # Keep the double-buffered f32 x tile under ~24 MiB of VMEM.
    vmem_cap_rows = max(16, ((24 << 20) // (2 * d_feature * 4)) // 16 * 16)
    return min(tm, vmem_cap_rows)


def _vmem_limit_bytes(tm, d_feature, h1_p, h2_p, nl_p):
    """Budget from real buffer sizes (double-buffered streams) + headroom."""
    x_bytes = 2 * tm * d_feature * 4                              # f32 input tile x2
    out_bytes = 2 * tm * nl_p * 2                                 # bf16 output tile x2
    w_bytes = 2 * (d_feature * h1_p + h1_p * h2_p + h2_p * nl_p) * 2
    b_bytes = 2 * (h1_p + h2_p + nl_p) * 4
    act_bytes = 6 * tm * max(d_feature, h1_p, h2_p, nl_p) * 4     # f32 intermediates
    total = x_bytes + out_bytes + w_bytes + b_bytes + act_bytes
    return int(min(max(2 * total, 8 << 20), 48 << 20))            # < v7x 64 MiB


@jax.jit
def label_cls_head_forward(emb, w1, b1, w2, b2, w3, b3):
    """Flatten + fused MLP head. emb: (batch, ..., d_model) -> (batch, n_labels)."""
    batch = emb.shape[0]
    x = emb.reshape(batch, -1)                                    # nn.Flatten(start_dim=1), stays f32
    d_feature = x.shape[1]
    h1, h2, n_labels = w1.shape[1], w2.shape[1], w3.shape[1]

    # Lane-pad only the narrow weight dims to 128 (d_feature is taken whole per
    # tile); keeps every matmul operand and the output store lane-dense.
    h1_p = _round_up(h1, 128)
    h2_p = _round_up(h2, 128)
    nl_p = _round_up(n_labels, 128)

    w1p = jnp.zeros((d_feature, h1_p), jnp.bfloat16).at[:, :h1].set(w1.astype(jnp.bfloat16))
    w2p = jnp.zeros((h1_p, h2_p), jnp.bfloat16).at[:h1, :h2].set(w2.astype(jnp.bfloat16))
    w3p = jnp.zeros((h2_p, nl_p), jnp.bfloat16).at[:h2, :n_labels].set(w3.astype(jnp.bfloat16))
    b1p = jnp.zeros((1, h1_p), jnp.float32).at[0, :h1].set(b1.reshape(-1).astype(jnp.float32))
    b2p = jnp.zeros((1, h2_p), jnp.float32).at[0, :h2].set(b2.reshape(-1).astype(jnp.float32))
    b3p = jnp.zeros((1, nl_p), jnp.float32).at[0, :n_labels].set(b3.reshape(-1).astype(jnp.float32))

    tm = _choose_tm(batch, d_feature)
    grid = (pl.cdiv(batch, tm),)                                  # ragged last tile, no batch pad
    resident = lambda shape: pl.BlockSpec(shape, lambda i: (0, 0))  # weights/biases: DMA once

    out_p = pl.pallas_call(
        _label_cls_head_kernel,
        out_shape=jax.ShapeDtypeStruct((batch, nl_p), jnp.bfloat16),
        grid=grid,
        in_specs=[
            pl.BlockSpec((tm, d_feature), lambda i: (i, 0)),       # x: batch-tiled f32 stream
            resident(w1p.shape), resident(b1p.shape),
            resident(w2p.shape), resident(b2p.shape),
            resident(w3p.shape), resident(b3p.shape),
        ],
        out_specs=pl.BlockSpec((tm, nl_p), lambda i: (i, 0)),
        compiler_params=pltpu.CompilerParams(
            dimension_semantics=("parallel",),                     # v7x: 2 TCs share the batch
            vmem_limit_bytes=_vmem_limit_bytes(tm, d_feature, h1_p, h2_p, nl_p),
        ),
    )(x, w1p, b1p, w2p, b2p, w3p, b3p)

    # Drop label padding outside the kernel; cast the tiny result back to f32.
    return out_p[:, :n_labels].astype(jnp.float32)


def _trunc_normal(key, shape, std=0.02):
    # Mirrors nn.init.trunc_normal_(mean=0, std=0.02) (truncation at +/-2 std).
    return std * jax.random.truncated_normal(key, -2.0, 2.0, shape, jnp.float32)


def _reference_forward(emb, w1, b1, w2, b2, w3, b3):
    x = emb.reshape(emb.shape[0], -1)
    h = jnp.maximum(x @ w1 + b1, 0.0)
    h = jnp.maximum(h @ w2 + b2, 0.0)
    return jax.nn.sigmoid(h @ w3 + b3)


if __name__ == "__main__":
    # params: d_feature = seq * d_model, d_hidden = [64, 32], n_labels = 8, dropout = 0.0
    batch, seq, d_model = 2, 8, 32
    d_feature = seq * d_model                     # 256
    d_hidden = [64, 32]
    n_labels = 8

    key = jax.random.PRNGKey(0)
    k_emb, k_w1, k_w2, k_w3 = jax.random.split(key, 4)

    emb = jax.random.normal(k_emb, (batch, seq, d_model), jnp.float32)

    # Deterministic parameter init (trunc_normal weights, zero bias), like _init_weight.
    w1 = _trunc_normal(k_w1, (d_feature, d_hidden[0]))
    b1 = jnp.zeros((d_hidden[0],), jnp.float32)
    w2 = _trunc_normal(k_w2, (d_hidden[0], d_hidden[1]))
    b2 = jnp.zeros((d_hidden[1],), jnp.float32)
    w3 = _trunc_normal(k_w3, (d_hidden[1], n_labels))
    b3 = jnp.zeros((n_labels,), jnp.float32)

    y_pred = label_cls_head_forward(emb, w1, b1, w2, b2, w3, b3)
    jax.block_until_ready(y_pred)

    y_ref = _reference_forward(emb, w1, b1, w2, b2, w3, b3)
    assert y_pred.shape == (batch, n_labels)
    # bf16 MXU inputs + bf16 output store -> relaxed tolerance vs f32 reference.
    assert jnp.allclose(y_pred, y_ref, atol=2e-2, rtol=2e-2)

    print("KERNEL_OK")
</pallas_src>

<mosaic_0001>
module attributes {stable_mosaic.version = 11 : i64} {
  func.func @_label_cls_head_kernel(%arg0: i32, %arg1: memref<2x256xf32, #tpu.memory_space<vmem>>, %arg2: memref<256x128xbf16, #tpu.memory_space<vmem>>, %arg3: memref<1x128xf32, #tpu.memory_space<vmem>>, %arg4: memref<128x128xbf16, #tpu.memory_space<vmem>>, %arg5: memref<1x128xf32, #tpu.memory_space<vmem>>, %arg6: memref<128x128xbf16, #tpu.memory_space<vmem>>, %arg7: memref<1x128xf32, #tpu.memory_space<vmem>>, %arg8: memref<2x128xbf16, #tpu.memory_space<vmem>>) attributes {dimension_semantics = [#tpu.dimension_semantics<parallel>], iteration_bounds = array<i64: 1>, scalar_prefetch = 0 : i64, scratch_operands = 0 : i64, tpu.core_type = #tpu.core_type<tc>, window_params = [{transform_indices = @transform_0, window_bounds = array<i64: 2, 256>}, {pipeline_mode = #tpu.pipeline_mode<synchronous>, transform_indices = @transform_1, window_bounds = array<i64: 256, 128>}, {pipeline_mode = #tpu.pipeline_mode<synchronous>, transform_indices = @transform_2, window_bounds = array<i64: 1, 128>}, {pipeline_mode = #tpu.pipeline_mode<synchronous>, transform_indices = @transform_3, window_bounds = array<i64: 128, 128>}, {pipeline_mode = #tpu.pipeline_mode<synchronous>, transform_indices = @transform_4, window_bounds = array<i64: 1, 128>}, {pipeline_mode = #tpu.pipeline_mode<synchronous>, transform_indices = @transform_5, window_bounds = array<i64: 128, 128>}, {pipeline_mode = #tpu.pipeline_mode<synchronous>, transform_indices = @transform_6, window_bounds = array<i64: 1, 128>}, {transform_indices = @transform_7, window_bounds = array<i64: 2, 128>}]} {
    %c0 = arith.constant 0 : index
    %c0_0 = arith.constant 0 : index
    %0 = vector.load %arg1[%c0, %c0_0] : memref<2x256xf32, #tpu.memory_space<vmem>>, vector<2x256xf32>
    %1 = arith.truncf %0 : vector<2x256xf32> to vector<2x256xbf16>
    %c0_1 = arith.constant 0 : index
    %c0_2 = arith.constant 0 : index
    %2 = vector.load %arg2[%c0_1, %c0_2] : memref<256x128xbf16, #tpu.memory_space<vmem>>, vector<256x128xbf16>
    %cst = arith.constant dense<0.000000e+00> : vector<2x128xf32>
    %3 = tpu.matmul %1, %2, %cst {dimension_numbers = #tpu.dot_dimension_numbers<[1], [0], [0], [1], [0, 0, 1, 1], [], []>} : vector<2x256xbf16>, vector<256x128xbf16>, vector<2x128xf32> -> vector<2x128xf32>
    %c0_3 = arith.constant 0 : index
    %c0_4 = arith.constant 0 : index
    %4 = vector.load %arg3[%c0_3, %c0_4] : memref<1x128xf32, #tpu.memory_space<vmem>>, vector<1x128xf32>
    %5 = vector.broadcast %4 : vector<1x128xf32> to vector<2x128xf32>
    %6 = arith.addf %3, %5 : vector<2x128xf32>
    %cst_5 = arith.constant 0.000000e+00 : f32
    %7 = vector.broadcast %cst_5 : f32 to vector<2x128xf32>
    %8 = arith.maximumf %6, %7 : vector<2x128xf32>
    %9 = arith.truncf %8 : vector<2x128xf32> to vector<2x128xbf16>
    %c0_6 = arith.constant 0 : index
    %c0_7 = arith.constant 0 : index
    %10 = vector.load %arg4[%c0_6, %c0_7] : memref<128x128xbf16, #tpu.memory_space<vmem>>, vector<128x128xbf16>
    %cst_8 = arith.constant dense<0.000000e+00> : vector<2x128xf32>
    %11 = tpu.matmul %9, %10, %cst_8 {dimension_numbers = #tpu.dot_dimension_numbers<[1], [0], [0], [1], [0, 0, 1, 1], [], []>} : vector<2x128xbf16>, vector<128x128xbf16>, vector<2x128xf32> -> vector<2x128xf32>
    %c0_9 = arith.constant 0 : index
    %c0_10 = arith.constant 0 : index
    %12 = vector.load %arg5[%c0_9, %c0_10] : memref<1x128xf32, #tpu.memory_space<vmem>>, vector<1x128xf32>
    %13 = vector.broadcast %12 : vector<1x128xf32> to vector<2x128xf32>
    %14 = arith.addf %11, %13 : vector<2x128xf32>
    %cst_11 = arith.constant 0.000000e+00 : f32
    %15 = vector.broadcast %cst_11 : f32 to vector<2x128xf32>
    %16 = arith.maximumf %14, %15 : vector<2x128xf32>
    %17 = arith.truncf %16 : vector<2x128xf32> to vector<2x128xbf16>
    %c0_12 = arith.constant 0 : index
    %c0_13 = arith.constant 0 : index
    %18 = vector.load %arg6[%c0_12, %c0_13] : memref<128x128xbf16, #tpu.memory_space<vmem>>, vector<128x128xbf16>
    %cst_14 = arith.constant dense<0.000000e+00> : vector<2x128xf32>
    %19 = tpu.matmul %17, %18, %cst_14 {dimension_numbers = #tpu.dot_dimension_numbers<[1], [0], [0], [1], [0, 0, 1, 1], [], []>} : vector<2x128xbf16>, vector<128x128xbf16>, vector<2x128xf32> -> vector<2x128xf32>
    %c0_15 = arith.constant 0 : index
    %c0_16 = arith.constant 0 : index
    %20 = vector.load %arg7[%c0_15, %c0_16] : memref<1x128xf32, #tpu.memory_space<vmem>>, vector<1x128xf32>
    %21 = vector.broadcast %20 : vector<1x128xf32> to vector<2x128xf32>
    %22 = arith.addf %19, %21 : vector<2x128xf32>
    %23 = arith.negf %22 : vector<2x128xf32>
    %24 = math.exp %23 : vector<2x128xf32>
    %cst_17 = arith.constant 1.000000e+00 : f32
    %25 = vector.broadcast %cst_17 : f32 to vector<2x128xf32>
    %26 = arith.addf %25, %24 : vector<2x128xf32>
    %27 = arith.divf %25, %26 : vector<2x128xf32>
    %28 = arith.truncf %27 : vector<2x128xf32> to vector<2x128xbf16>
    %c0_18 = arith.constant 0 : index
    %c0_19 = arith.constant 0 : index
    %29 = vector.load %arg8[%c0_18, %c0_19] : memref<2x128xbf16, #tpu.memory_space<vmem>>, vector<2x128xbf16>
    tpu.vector_store %arg8[%c0_18, %c0_19], %28 {strides = array<i32>} : memref<2x128xbf16, #tpu.memory_space<vmem>>, vector<2x128xbf16>,
    return
  }
  func.func @transform_0(%arg0: i32) -> (i32, i32) {
    %c0_i32 = arith.constant 0 : i32
    %c0_i32_0 = arith.constant 0 : i32
    return %arg0, %c0_i32 : i32, i32
  }
  func.func @transform_1(%arg0: i32) -> (i32, i32) {
    %c0_i32 = arith.constant 0 : i32
    %c0_i32_0 = arith.constant 0 : i32
    %c0_i32_1 = arith.constant 0 : i32
    return %c0_i32, %c0_i32_0 : i32, i32
  }
  func.func @transform_2(%arg0: i32) -> (i32, i32) {
    %c0_i32 = arith.constant 0 : i32
    %c0_i32_0 = arith.constant 0 : i32
    %c0_i32_1 = arith.constant 0 : i32
    return %c0_i32, %c0_i32_0 : i32, i32
  }
  func.func @transform_3(%arg0: i32) -> (i32, i32) {
    %c0_i32 = arith.constant 0 : i32
    %c0_i32_0 = arith.constant 0 : i32
    %c0_i32_1 = arith.constant 0 : i32
    return %c0_i32, %c0_i32_0 : i32, i32
  }
  func.func @transform_4(%arg0: i32) -> (i32, i32) {
    %c0_i32 = arith.constant 0 : i32
    %c0_i32_0 = arith.constant 0 : i32
    %c0_i32_1 = arith.constant 0 : i32
    return %c0_i32, %c0_i32_0 : i32, i32
  }
  func.func @transform_5(%arg0: i32) -> (i32, i32) {
    %c0_i32 = arith.constant 0 : i32
    %c0_i32_0 = arith.constant 0 : i32
    %c0_i32_1 = arith.constant 0 : i32
    return %c0_i32, %c0_i32_0 : i32, i32
  }
  func.func @transform_6(%arg0: i32) -> (i32, i32) {
    %c0_i32 = arith.constant 0 : i32
    %c0_i32_0 = arith.constant 0 : i32
    %c0_i32_1 = arith.constant 0 : i32
    return %c0_i32, %c0_i32_0 : i32, i32
  }
  func.func @transform_7(%arg0: i32) -> (i32, i32) {
    %c0_i32 = arith.constant 0 : i32
    %c0_i32_0 = arith.constant 0 : i32
    return %arg0, %c0_i32 : i32, i32
  }
}

</mosaic_0001>

<bundles_post_ra>
// kernel: label_cls_head_forward.1
= control target key start
LH: loop header
LB: loop body
LE: loop exit
PB: predicated region body
PF: predicated region fallthrough
CT: control target
= control target key end

     0   :  { %v609_v1 = vmov 0.0   ;;  %vm610_vm0 = vmmov 0   ;;  %s780_s1 = inlined_call_operand.vmem [shape: bf16[256,128], index: 1, kind: input, shape index: {}]   ;;  %s781_s0 = inlined_call_operand.vmem [shape: f32[2,256], index: 0, kind: input, shape index: {}]   ;;  %s782_s3 = inlined_call_operand.vmem [shape: bf16[128,128], index: 3, kind: input, shape index: {}]   ;;  %s783_s5 = inlined_call_operand.vmem [shape: bf16[128,128], index: 5, kind: input, shape index: {}]   ;;  %s784_s2 = inlined_call_operand.vmem [shape: f32[1,128], index: 2, kind: input, shape index: {}]   ;;  %s785_s4 = inlined_call_operand.vmem [shape: f32[1,128], index: 4, kind: input, shape index: {}]   ;;  %s786_s6 = inlined_call_operand.vmem [shape: f32[1,128], index: 6, kind: input, shape index: {}]   ;;  %s787_s7 = inlined_call_operand.vmem [shape: bf16[2,128], index: 7, kind: output, shape index: {}]  }
   0x1   :  { %v573_v0 = vld [vmem:[%s780_s1 + $0x78] sm:$0xff]   ;;  %531 = vmatprep.subr.bf16.mxu1 %v609_v1  ;;  %v575_v3 = vld [vmem:[%s780_s1 + $0x70] sm:$0xff]   ;;  %v577_v5 = vld [vmem:[%s780_s1 + $0x68] sm:$0xff]   ;;  %547 = vmatprep.mubr.msk.bf16.mxu1 %vm610_vm0, %v609_v1 }
   0x2   :  { %v574_v2 = vld [vmem:[%s780_s1 + $0x38] sm:$0xff]   ;;  %491 = vmatprep.subr.bf16.mxu0 %v573_v0  ;;  %v576_v4 = vld [vmem:[%s780_s1 + $0x30] sm:$0xff]   ;;  %v578_v6 = vld [vmem:[%s780_s1 + $0x28] sm:$0xff]  }
   0x3   :  { %492 = vmatpush3.bf16.msra.mxu0 %v574_v2  ;;  %v579_v7 = vld [vmem:[%s780_s1 + $0x60] sm:$0xff]   ;;  %v581_v9 = vld [vmem:[%s780_s1 + $0x58] sm:$0xff]   ;;  %v583_v11 = vld [vmem:[%s780_s1 + $0x50] sm:$0xff]  }
   0x4   :  { %493 = vmatprep.subr.bf16.mxu0 %v575_v3  ;;  %v580_v8 = vld [vmem:[%s780_s1 + $0x20] sm:$0xff]   ;;  %v582_v10 = vld [vmem:[%s780_s1 + $0x18] sm:$0xff]   ;;  %v584_v15 = vld [vmem:[%s780_s1 + $0x10] sm:$0xff]  }
   0x5   :  { %v454_v12 = vld.sshfl [vmem:[%s781_s0] sm:$0x33 pattern:$0x76325410]  ;;  %v589_v14 = vld [vmem:[%s782_s3 + $0x38] sm:$0xff]   ;;  %v590_v17 = vld [vmem:[%s782_s3 + $0x30] sm:$0xff]  }
   0x6   :  { %v36_v13 = vcombine.high %v454_v12, %v454_v12  ;;  %532 = vmatpush3.bf16.msra.mxu1 %v589_v14  ;;  %v585_v18 = vld [vmem:[%s780_s1 + $0x48] sm:$0xff]   ;;  %v587_v21 = vld [vmem:[%s780_s1 + $0x40] sm:$0xff]   ;;  %v39_v24 = vpack.c.bf16 %v454_v12, %v454_v12  ;;  %v593_v25 = vld [vmem:[%s782_s3 + $0x18] sm:$0xff]  }
   0x7   :  { %494 = vmatpush3.bf16.msra.mxu0 %v576_v4  ;;  %533 = vmatprep.subr.bf16.mxu1 %v609_v1  ;;  %v586_v19 = vld [vmem:[%s780_s1 + $0x8] sm:$0xff]   ;;  %v588_v22 = vld [vmem:[%s780_s1] sm:$0xff]   ;;  %v594_v26 = vld [vmem:[%s782_s3 + $0x10] sm:$0xff]  }
   0x8   :  { %495 = vmatprep.subr.bf16.mxu0 %v577_v5  ;;  %v40_v16 = vpack.c.bf16 %v36_v13, %v36_v13  ;;  %v591_v20 = vld [vmem:[%s782_s3 + $0x28] sm:$0xff]   ;;  %v592_v23 = vld [vmem:[%s782_s3 + $0x20] sm:$0xff]   ;;  %v597_v29 = vld [vmem:[%s783_s5 + $0x38] sm:$0xff]  }
   0x9   :  { %v595_v27 = vld [vmem:[%s782_s3 + $0x8] sm:$0xff]   ;;  %v596_v28 = vld [vmem:[%s782_s3] sm:$0xff]   ;;  %v598_v30 = vld [vmem:[%s783_s5 + $0x30] sm:$0xff]  }
   0xa   :  { %208 = vmatprep.mubr.bf16.mxu0 %v40_v16  ;;  %534 = vmatpush3.bf16.msra.mxu1 %v590_v17  ;;  %v599_v31 = vld [vmem:[%s783_s5 + $0x28] sm:$0xff]   ;;  %v600_v32 = vld [vmem:[%s783_s5 + $0x20] sm:$0xff]   ;;  %v601_v33 = vld [vmem:[%s783_s5 + $0x18] sm:$0xff]  }
   0xb   :  { %496 = vmatpush3.bf16.msra.mxu0 %v578_v6  ;;  %535 = vmatprep.subr.bf16.mxu1 %v609_v1  ;;  %v602_v34 = vld [vmem:[%s783_s5 + $0x10] sm:$0xff]   ;;  %v455_v36 = vld [vmem:[%s784_s2] ss:$0 sm:$0xff]  ;;  %v603_v44 = vld [vmem:[%s783_s5 + $0x8] sm:$0xff]  }
   0xc   :  { %497 = vmatprep.subr.bf16.mxu0 %v579_v7  ;;  %v604_v45 = vld [vmem:[%s783_s5] sm:$0xff]  }
   0xd   :  { %v472_v46 = vld [vmem:[%s785_s4] ss:$0 sm:$0xff] }
   0xe   :  { %536 = vmatpush3.bf16.msra.mxu1 %v591_v20  ;;  %v481_v54 = vld [vmem:[%s786_s6] ss:$0 sm:$0xff] }
   0xf   :  { %498 = vmatpush3.bf16.msra.mxu0 %v580_v8  ;;  %537 = vmatprep.subr.bf16.mxu1 %v609_v1 }
  0x10   :  { %499 = vmatprep.subr.bf16.mxu0 %v581_v9 }
  0x12   :  { %538 = vmatpush3.bf16.msra.mxu1 %v592_v23 }
  0x13   :  { %500 = vmatpush3.bf16.msra.mxu0 %v582_v10  ;;  %539 = vmatprep.subr.bf16.mxu1 %v609_v1 }
  0x14   :  { %501 = vmatprep.subr.bf16.mxu0 %v583_v11 }
  0x16   :  { %540 = vmatpush3.bf16.msra.mxu1 %v593_v25 }
  0x17   :  { %502 = vmatpush3.bf16.msra.mxu0 %v584_v15  ;;  %541 = vmatprep.subr.bf16.mxu1 %v609_v1 }
  0x18   :  { %503 = vmatprep.subr.bf16.mxu0 %v585_v18 }
  0x1a   :  { %542 = vmatpush3.bf16.msra.mxu1 %v594_v26 }
  0x1b   :  { %504 = vmatpush3.bf16.msra.mxu0 %v586_v19  ;;  %543 = vmatprep.subr.bf16.mxu1 %v609_v1 }
  0x1c   :  { %505 = vmatprep.subr.bf16.mxu0 %v587_v21 }
  0x1e   :  { %544 = vmatpush3.bf16.msra.mxu1 %v595_v27 }
  0x1f   :  { %506 = vmatpush3.bf16.msra.mxu0 %v588_v22  ;;  %545 = vmatprep.subr.bf16.mxu1 %v609_v1 }
  0x20   :  { %551 = vmatprep.subr.bf16.mxu0 %v609_v1 }
  0x22   :  { %209 = vmatmul.mubr.bf16.vlgmr.msra.gmra.mxu0 %v39_v24  ;;  %546 = vmatpush3.bf16.msra.mxu1 %v596_v28 }
  0x23   :  { %567 = vmatprep.mubr.msk.bf16.mxu0 %vm610_vm0, %v609_v1  ;;  %552 = vmatpush3.bf16.msra.mxu0 %v597_v29 }
  0x24   :  { %553 = vmatprep.subr.bf16.mxu0 %v609_v1 }
  0x27   :  { %554 = vmatpush3.bf16.msra.mxu0 %v598_v30 }
  0x28   :  { %555 = vmatprep.subr.bf16.mxu0 %v609_v1 }
  0x2b   :  { %556 = vmatpush3.bf16.msra.mxu0 %v599_v31 }
  0x2c   :  { %557 = vmatprep.subr.bf16.mxu0 %v609_v1 }
  0x2f   :  { %558 = vmatpush3.bf16.msra.mxu0 %v600_v32 }
  0x30   :  { %559 = vmatprep.subr.bf16.mxu0 %v609_v1 }
  0x33   :  { %560 = vmatpush3.bf16.msra.mxu0 %v601_v33 }
  0x34   :  { %561 = vmatprep.subr.bf16.mxu0 %v609_v1 }
  0x37   :  { %562 = vmatpush3.bf16.msra.mxu0 %v602_v34 }
  0x38   :  { %563 = vmatprep.subr.bf16.mxu0 %v609_v1 }
  0x3b   :  { %564 = vmatpush3.bf16.msra.mxu0 %v603_v44 }
  0x3c   :  { %565 = vmatprep.subr.bf16.mxu0 %v609_v1 }
  0x3f   :  { %566 = vmatpush3.bf16.msra.mxu0 %v604_v45 }
  0xe2   :  { %v507_v35 = vpop.f32.mrf.mxu0 }
  0xe4   :  { %v508_v37 = vpop.f32.mrf.mxu0 }
  0xe5   :  { %v509_v38 = vadd.f32 %v508_v37, %v507_v35 }
  0xe6   :  { %v510_v39 = vpop.f32.mrf.mxu0 }
  0xe7   :  { %v211_v40 = vadd.f32 %v509_v38, %v455_v36 }
  0xe8   :  { %v511_v41 = vpop.f32.mrf.mxu0 }
  0xe9   :  { %v216_v42 = vmax.f32 %v211_v40, 0.0 }
  0xeb   :  { %v217_v43 = vpack.c.bf16 %v216_v42, %v216_v42 }
  0xed   :  { %548 = vmatmul.mubr.bf16.vlgmr.msra.gmra.mxu1 %v217_v43 }
 0x1ad   :  { %v323_v47 = vpop.f32.mrf.mxu1 }
 0x1ae   :  { %v324_v48 = vadd.f32 %v472_v46, %v323_v47 }
 0x1af   :  { %v549_v49 = vpop.f32.mrf.mxu1 }
 0x1b0   :  { %v329_v50 = vmax.f32 %v324_v48, 0.0 }
 0x1b1   :  { %v326_v51 = vpop.f32.mrf.mxu1 }
 0x1b2   :  { %v330_v52 = vpack.c.bf16 %v329_v50, %v329_v50 }
 0x1b3   :  { %v550_v53 = vpop.f32.mrf.mxu1 }
 0x1b4   :  { %568 = vmatmul.mubr.bf16.vlgmr.msra.gmra.mxu0 %v330_v52 }
 0x274   :  { %v436_v55 = vpop.f32.mrf.mxu0 }
 0x275   :  { %v437_v56 = vadd.f32 %v481_v54, %v436_v55 }
 0x276   :  { %v569_v57 = vpop.f32.mrf.mxu0 }
 0x277   :  { %v490_v58 = vmul.f32 -1.442695, %v437_v56 }
 0x278   :  { %v439_v59 = vpop.f32.mrf.mxu0 }
 0x279   :  { %605 = vpow2.f32 %v490_v58 }
 0x27a   :  { %v570_v60 = vpop.f32.mrf.mxu0 }
 0x286   :  { %v606_v61 = vpop.eup %605 }
 0x287   :  { %v445_v62 = vadd.f32 1.0, %v606_v61 }
 0x289   :  { %607 = vrcp.f32 %v445_v62 }
 0x296   :  { %v608_v63 = vpop.eup %607 }
 0x297   :  { %v448_v0 = vpack.c.bf16 %v608_v63, %v608_v63 }
 0x299   :  { %449 = vst [vmem:[%s787_s7] sm:$0x1] %v448_v0 }

</bundles_post_ra>
